<compile_context>
chip_gen: v6e
topology: v6e:2x2x1
jax: 0.10.0
libtpu: 0.0.40
codegen_flags: <defaults>
</compile_context>

<pallas_src>
import jax
import jax.numpy as jnp
from jax.experimental import pallas as pl
from jax.experimental.pallas import tpu as pltpu


def _upsample_kernel(x_ref, w_ref, b_ref, o_ref):
    # x_ref: (TM, C_in)            one tile of flattened input rows (TM = TH*W)
    # w_ref: (f, C_in, f*C_out)    full weight, VMEM-resident, sliced by kh
    # b_ref: (1, f*C_out)          bias replicated over kw, (kw, co)-ordered
    # o_ref: (TH, 1, W, f*C_out)   NHWC-ordered output slab for this (row-tile, kh)
    kh = pl.program_id(1)
    w_kh = w_ref[kh]                                        # (C_in, f*C_out)
    acc = jnp.dot(x_ref[...], w_kh,
                  preferred_element_type=jnp.float32)       # (TM, f*C_out) on MXU
    acc = acc + b_ref[...]                                  # broadcast bias (VPU)
    th, _, w, d = o_ref.shape
    o_ref[...] = acc.reshape(th, 1, w, d).astype(o_ref.dtype)


def upsample2d_pallas(x, weight, bias, factor, *, target_rows=512):
    """ConvTranspose2d(C, C, kernel_size=factor, stride=factor) forward.

    Args:
      x:      (N, C_in, H, W)        NCHW, like PyTorch.
      weight: (C_in, C_out, f, f)    PyTorch ConvTranspose2d weight layout.
      bias:   (C_out,)
      factor: int, kernel_size == stride.
      target_rows: approx. number of flattened matmul rows (TM) per grid step.
                   Lower this (e.g. 256) for v5e's 16 MiB scoped VMEM / v7x's
                   smaller physical VMEM with very wide channel counts.

    Returns:
      (N, C_out, H*f, W*f)
    """
    N, C_in, H, W = x.shape
    C_out = weight.shape[1]
    f = factor
    D = f * C_out           # output lane width per kh: (kw, co)-ordered, co-major
    NH = N * H

    # NCHW -> NHWC, flatten to (N*H*W, C_in): channels on the contraction axis.
    x_flat = jnp.transpose(x, (0, 2, 3, 1)).reshape(NH * W, C_in)

    # Weight (C_in, C_out, kh, kw) -> (kh, C_in, kw*C_out): one (C_in, f*C_out)
    # matrix per kh, with C_out innermost on the lane axis (lane-dense stores).
    w_r = jnp.transpose(weight, (2, 0, 3, 1)).reshape(f, C_in, D)
    # Bias per output channel, replicated across kw positions, same (kw, co) order.
    b_r = jnp.broadcast_to(bias[None, :], (f, C_out)).reshape(1, D)

    # Pick TH = rows of the (N*H) axis per tile such that TH divides N*H and
    # TH*W is close to target_rows (keeps tiles big enough to hide DMA latency
    # but small enough for double-buffered VMEM on all generations).
    th_target = max(1, min(NH, max(1, target_rows // max(W, 1))))
    TH = 1
    for d_cand in range(th_target, 0, -1):
        if NH % d_cand == 0:
            TH = d_cand
            break
    TM = TH * W
    grid_nh = NH // TH

    out4 = pl.pallas_call(
        _upsample_kernel,
        out_shape=jax.ShapeDtypeStruct((NH, f, W, D), x.dtype),
        grid_spec=pltpu.PrefetchScalarGridSpec(
            num_scalar_prefetch=0,
            grid=(grid_nh, f),
            in_specs=[
                # x tile: index ignores kh -> Pallas skips re-DMA across kh steps.
                pl.BlockSpec((TM, C_in), lambda i, kh: (i, 0)),
                # weight / bias: constant index -> loaded once, stay VMEM-resident.
                pl.BlockSpec((f, C_in, D), lambda i, kh: (0, 0, 0)),
                pl.BlockSpec((1, D), lambda i, kh: (0, 0)),
            ],
            out_specs=pl.BlockSpec((TH, 1, W, D), lambda i, kh: (i, kh, 0, 0)),
        ),
        compiler_params=pltpu.CompilerParams(
            # row-tile axis shards across TensorCores (v7x megacore); kh is a
            # short serial inner loop.
            dimension_semantics=("parallel", "arbitrary")),
    )(x_flat, w_r, b_r)

    # out4[nh, kh, w, kw*C_out + co] is already NHWC in memory order
    # (n, h, kh, w, kw, co): the reshape below is free, only the final
    # NHWC -> NCHW transpose (to match the PyTorch module) touches HBM again.
    out_nhwc = out4.reshape(N, H * f, W * f, C_out)
    return jnp.transpose(out_nhwc, (0, 3, 1, 2))


def _reference(x, weight, bias, factor):
    # Pure-JAX reference of the same ConvTranspose2d semantics (no torch).
    N, C_in, H, W = x.shape
    C_out = weight.shape[1]
    f = factor
    out = jnp.einsum("nchw,cokl->nohwkl", x, weight)
    out = jnp.transpose(out, (0, 1, 2, 4, 3, 5)).reshape(N, C_out, H * f, W * f)
    return out + bias[None, :, None, None]


if __name__ == "__main__":
    key = jax.random.PRNGKey(0)
    k_x, k_w, k_b = jax.random.split(key, 3)

    N, C, H, W = 2, 4, 16, 16
    factor = 2

    x = jax.random.normal(k_x, (N, C, H, W), dtype=jnp.float32)
    # nn.ConvTranspose2d(channels, channels, kernel_size=factor, stride=factor):
    # weight shape (in_channels, out_channels, kH, kW), bias shape (out_channels,)
    weight = 0.1 * jax.random.normal(k_w, (C, C, factor, factor), dtype=jnp.float32)
    bias = 0.1 * jax.random.normal(k_b, (C,), dtype=jnp.float32)

    ref = _reference(x, weight, bias, factor)

    # Default tiling (single row-tile at this small shape).
    out = jax.block_until_ready(upsample2d_pallas(x, weight, bias, factor))
    assert out.shape == (N, C, H * factor, W * factor), out.shape
    assert jnp.allclose(out, ref, atol=1e-5, rtol=1e-5), "mismatch vs reference"

    # Smaller tiles -> multi-step pipelined grid path is also exercised.
    out2 = jax.block_until_ready(
        upsample2d_pallas(x, weight, bias, factor, target_rows=128))
    assert jnp.allclose(out2, ref, atol=1e-5, rtol=1e-5), "mismatch (tiled path)"

    print("KERNEL_OK")
</pallas_src>

<mosaic_0001>
module attributes {stable_mosaic.version = 11 : i64} {
  func.func @_upsample_kernel(%arg0: i32, %arg1: i32, %arg2: memref<512x4xf32, #tpu.memory_space<vmem>>, %arg3: memref<2x4x8xf32, #tpu.memory_space<vmem>>, %arg4: memref<1x8xf32, #tpu.memory_space<vmem>>, %arg5: memref<32x1x16x8xf32, #tpu.memory_space<vmem>>) attributes {dimension_semantics = [#tpu.dimension_semantics<parallel>, #tpu.dimension_semantics<arbitrary>], iteration_bounds = array<i64: 1, 2>, scalar_prefetch = 0 : i64, scratch_operands = 0 : i64, tpu.core_type = #tpu.core_type<tc>, window_params = [{transform_indices = @transform_0, window_bounds = array<i64: 512, 4>}, {pipeline_mode = #tpu.pipeline_mode<synchronous>, transform_indices = @transform_1, window_bounds = array<i64: 2, 4, 8>}, {pipeline_mode = #tpu.pipeline_mode<synchronous>, transform_indices = @transform_2, window_bounds = array<i64: 1, 8>}, {transform_indices = @transform_3, window_bounds = array<i64: 32, 1, 16, 8>}]} {
    %0 = arith.index_cast %arg1 : i32 to index
    %c0 = arith.constant 0 : index
    %c0_0 = arith.constant 0 : index
    %1 = vector.load %arg3[%0, %c0, %c0_0] : memref<2x4x8xf32, #tpu.memory_space<vmem>>, vector<1x4x8xf32>
    %2 = vector.shape_cast %1 : vector<1x4x8xf32> to vector<4x8xf32>
    %c0_1 = arith.constant 0 : index
    %c0_2 = arith.constant 0 : index
    %3 = vector.load %arg2[%c0_1, %c0_2] : memref<512x4xf32, #tpu.memory_space<vmem>>, vector<512x4xf32>
    %cst = arith.constant dense<0.000000e+00> : vector<512x8xf32>
    %4 = tpu.matmul %3, %2, %cst {dimension_numbers = #tpu.dot_dimension_numbers<[1], [0], [0], [1], [0, 0, 1, 1], [], []>} : vector<512x4xf32>, vector<4x8xf32>, vector<512x8xf32> -> vector<512x8xf32>
    %c0_3 = arith.constant 0 : index
    %c0_4 = arith.constant 0 : index
    %5 = vector.load %arg4[%c0_3, %c0_4] : memref<1x8xf32, #tpu.memory_space<vmem>>, vector<1x8xf32>
    %6 = vector.broadcast %5 : vector<1x8xf32> to vector<512x8xf32>
    %7 = arith.addf %4, %6 : vector<512x8xf32>
    %8 = vector.shape_cast %7 : vector<512x8xf32> to vector<32x1x16x8xf32>
    %c0_5 = arith.constant 0 : index
    %c0_6 = arith.constant 0 : index
    %c0_7 = arith.constant 0 : index
    %c0_8 = arith.constant 0 : index
    %9 = vector.load %arg5[%c0_5, %c0_6, %c0_7, %c0_8] : memref<32x1x16x8xf32, #tpu.memory_space<vmem>>, vector<32x1x16x8xf32>
    tpu.vector_store %arg5[%c0_5, %c0_6, %c0_7, %c0_8], %8 {strides = array<i32>} : memref<32x1x16x8xf32, #tpu.memory_space<vmem>>, vector<32x1x16x8xf32>,
    return
  }
  func.func @transform_0(%arg0: i32, %arg1: i32) -> (i32, i32) {
    %c0_i32 = arith.constant 0 : i32
    %c0_i32_0 = arith.constant 0 : i32
    return %arg0, %c0_i32 : i32, i32
  }
  func.func @transform_1(%arg0: i32, %arg1: i32) -> (i32, i32, i32) {
    %c0_i32 = arith.constant 0 : i32
    %c0_i32_0 = arith.constant 0 : i32
    %c0_i32_1 = arith.constant 0 : i32
    %c0_i32_2 = arith.constant 0 : i32
    return %c0_i32, %c0_i32_0, %c0_i32_1 : i32, i32, i32
  }
  func.func @transform_2(%arg0: i32, %arg1: i32) -> (i32, i32) {
    %c0_i32 = arith.constant 0 : i32
    %c0_i32_0 = arith.constant 0 : i32
    %c0_i32_1 = arith.constant 0 : i32
    return %c0_i32, %c0_i32_0 : i32, i32
  }
  func.func @transform_3(%arg0: i32, %arg1: i32) -> (i32, i32, i32, i32) {
    %c0_i32 = arith.constant 0 : i32
    %c0_i32_0 = arith.constant 0 : i32
    %c0_i32_1 = arith.constant 0 : i32
    return %arg0, %arg1, %c0_i32, %c0_i32_0 : i32, i32, i32, i32
  }
}

</mosaic_0001>

<bundles_post_ra>
// kernel: tpu_custom_call.1
= control target key start
LH: loop header
LB: loop body
LE: loop exit
PB: predicated region body
PF: predicated region fallthrough
CT: control target
= control target key end

     0   :  { %s1612_s12 = smov 0   ;;  %s1614_s13 = smov 0   ;;  %s2266_s0 = inlined_call_operand.vmem [shape: f32[512,4], index: 0, kind: input, shape index: {}]   ;;  %s2267_s1 = inlined_call_operand.vmem [shape: f32[2,4,8], index: 1, kind: input, shape index: {}]   ;;  %s2268_s2 = inlined_call_operand.vmem [shape: f32[1,8], index: 2, kind: input, shape index: {}]   ;;  %s2269_s3 = inlined_call_operand.vmem [shape: f32[32,2,16,8], index: 3, kind: output, shape index: {}]  }
   0x1   :  { %s1616_s14 = smov 0   ;;  %s1618_s15 = smov 0  }
   0x2   :  { %s1620_s16 = smov 0  }
   0x3 LB: > { %s1268_s17 = sadd.s32 4294967295, %s1590_s16   ;;  %s22_s18 = sadd.s32 1, %s1586_s15  ;;  %s1590_s16 = sphi %s1620_s16, %s13_s16   ;;  %s1586_s15 = sphi %s1618_s15, %s2274_s15   ;;  %s1582_s14 = sphi %s1616_s14, %s2273_s14   ;;  %s1578_s13 = sphi %s1614_s13, %s2272_s13   ;;  %s1574_s12 = sphi %s1612_s12, %s2271_s12  }
   0x4   : > { %p23_p0 = scmp.ge.s32.totalorder %s22_s18, 2  ;;  %s102_s19 = sadd.s32 1, %s1578_s13 }
   0x5   : > { %p112_p1 = scmp.ne.s32.totalorder %s1578_s13, %s1574_s12  ;;  %p113_p2 = scmp.eq.s32.totalorder %s1268_s17, 1 }
   0x6   : > { %s2276_s18 = smov (%p23_p0, %s22_s18), 0  ;;  %p1272_p4 = scmp.ge.s32.totalorder %s1590_s16, 1 }
   0x7   : > { %p1644_p3 = por %p113_p2, %p112_p1  ;;  %s98_s21 = ssub.s32 %s1586_s15, %s2276_s18 }
   0x8   : > { %p152_p5 = scmp.lt.s32.totalorder %s1590_s16, 3  ;;  %p100_p6 = scmp.eq.s32.totalorder %s98_s21, 0 }
   0xa   : > { %p153_p7 = pnand %p1272_p4, %p152_p5 }
   0xb   : > { %s1653_s22 = scalar_select %p100_p6, %s1578_s13, %s102_s19  }
   0xc   : > { %156 = sbr.rel (%p153_p7) target bundleno = 297 (0x129), region = 32  ;;  %s1274_s23 = sshll.u32 (!%p153_p7), %s1582_s14, 2 }
   0xd   : > { %s183_s30 = scalar_lea.vmem (!%p153_p7), %s2267_s1, %s1274_s23  ;;  %s172_s21 = sand.u32 (!%p153_p7), 1, %s1574_s12  }
   0xe   : > { %s1273_s23 = sshll.u32 (!%p153_p7), %s172_s21, 9 }
   0xf   : > { %s1923_s26 = scalar_lea.vmem (!%p153_p7), [#allocation2], %s1273_s23 }
  0x11   : > { %vm449_vm0 = vcmask 1043456   ;;  %v185_v0 = vld [vmem:[%s2266_s0] sm:$0xff]  ;;  %vm256_vm1 = vcmask 31744   ;;  %v186_v3 = vld [vmem:[%s2266_s0 + $0x8] sm:$0xff]  ;;  %v187_v5 = vld [vmem:[%s2266_s0 + $0x10] sm:$0xff]  ;;  %vm838_vm2 = vcmask 64512  }
  0x12   : > { %v217_v1 = vld [vmem:[%s2266_s0 + $0x100] sm:$0xff]  ;;  %1414 = vmatprep.mubr.msk.f32.mxu0 %vm256_vm1, %v185_v0  ;;  %v218_v4 = vld [vmem:[%s2266_s0 + $0x108] sm:$0xff]  ;;  %v219_v6 = vld [vmem:[%s2266_s0 + $0x110] sm:$0xff]  ;;  %s1346_s12 = sshll.u32 (%p1644_p3), %s1582_s14, 4 }
  0x13   : > { %1462 = vmatprep.mubr.msk.f32.mxu1 %vm256_vm1, %v217_v1  ;;  %v184_v2 = vld [vmem:[%s183_s30] sm:$0xf]  ;;  %v188_v7 = vld [vmem:[%s2266_s0 + $0x18] sm:$0xff]  ;;  %v190_v11 = vld [vmem:[%s2266_s0 + $0x28] sm:$0xff]  ;;  %s2124_s29 = scalar_lea.vmem (%p1644_p3), %s2269_s3, %s1346_s12 }
  0x14   : > { %1412 = vmatprep.subr.msk.mxu0 %vm449_vm0, %v184_v2  ;;  %1510 = vmatprep.subr.msk.mxu1 %vm449_vm0, %v184_v2  ;;  %v220_v8 = vld [vmem:[%s2266_s0 + $0x118] sm:$0xff]  ;;  %v189_v9 = vld [vmem:[%s2266_s0 + $0x20] sm:$0xff]  ;;  %v222_v12 = vld [vmem:[%s2266_s0 + $0x128] sm:$0xff] }
  0x15   : > { %1413 = vmatpush3.msk.msra.mxu0 %vm449_vm0, %v184_v2  ;;  %1511 = vmatpush3.msk.msra.mxu1 %vm449_vm0, %v184_v2  ;;  %v221_v10 = vld [vmem:[%s2266_s0 + $0x120] sm:$0xff]  ;;  %v191_v13 = vld [vmem:[%s2266_s0 + $0x30] sm:$0xff]  ;;  %v192_v15 = vld [vmem:[%s2266_s0 + $0x38] sm:$0xff] }
  0x16   : > { %1415 = vmatmul.mubr.msk.f32.vlgmr.msra.gmra.mxu0 %vm256_vm1, %v186_v3  ;;  %1463 = vmatmul.mubr.msk.f32.vlgmr.msra.gmra.mxu1 %vm256_vm1, %v218_v4  ;;  %v223_v14 = vld [vmem:[%s2266_s0 + $0x130] sm:$0xff]  ;;  %v224_v16 = vld [vmem:[%s2266_s0 + $0x138] sm:$0xff]  ;;  %v193_v17 = vld [vmem:[%s2266_s0 + $0x40] sm:$0xff] }
  0x17   : > { %1417 = vmatprep.mubr.msk.f32.mxu0 %vm256_vm1, %v187_v5  ;;  %1465 = vmatprep.mubr.msk.f32.mxu1 %vm256_vm1, %v219_v6  ;;  %v225_v18 = vld [vmem:[%s2266_s0 + $0x140] sm:$0xff]  ;;  %v194_v19 = vld [vmem:[%s2266_s0 + $0x48] sm:$0xff]  ;;  %v195_v21 = vld [vmem:[%s2266_s0 + $0x50] sm:$0xff] }
  0x18   : > { %v226_v20 = vld [vmem:[%s2266_s0 + $0x148] sm:$0xff]  ;;  %v227_v22 = vld [vmem:[%s2266_s0 + $0x150] sm:$0xff]  ;;  %v196_v23 = vld [vmem:[%s2266_s0 + $0x58] sm:$0xff] }
  0x19   : > { %v228_v24 = vld [vmem:[%s2266_s0 + $0x158] sm:$0xff]  ;;  %v197_v25 = vld [vmem:[%s2266_s0 + $0x60] sm:$0xff]  ;;  %v198_v27 = vld [vmem:[%s2266_s0 + $0x68] sm:$0xff] }
  0x1a   : > { %1418 = vmatmul.mubr.msk.f32.gmra.mxu0 %vm256_vm1, %v188_v7  ;;  %1466 = vmatmul.mubr.msk.f32.gmra.mxu1 %vm256_vm1, %v220_v8  ;;  %v229_v26 = vld [vmem:[%s2266_s0 + $0x160] sm:$0xff]  ;;  %v230_v28 = vld [vmem:[%s2266_s0 + $0x168] sm:$0xff]  ;;  %v199_v29 = vld [vmem:[%s2266_s0 + $0x70] sm:$0xff] }
  0x1b   : > { %1420 = vmatprep.mubr.msk.f32.mxu0 %vm256_vm1, %v189_v9  ;;  %1468 = vmatprep.mubr.msk.f32.mxu1 %vm256_vm1, %v221_v10  ;;  %v231_v30 = vld [vmem:[%s2266_s0 + $0x170] sm:$0xff]  ;;  %v200_v31 = vld [vmem:[%s2266_s0 + $0x78] sm:$0xff]  ;;  %v201_v33 = vld [vmem:[%s2266_s0 + $0x80] sm:$0xff] }
  0x1c   : > { %v232_v32 = vld [vmem:[%s2266_s0 + $0x178] sm:$0xff]  ;;  %v233_v34 = vld [vmem:[%s2266_s0 + $0x180] sm:$0xff]  ;;  %v202_v35 = vld [vmem:[%s2266_s0 + $0x88] sm:$0xff] }
  0x1d   : > { %v234_v36 = vld [vmem:[%s2266_s0 + $0x188] sm:$0xff]  ;;  %v203_v37 = vld [vmem:[%s2266_s0 + $0x90] sm:$0xff]  ;;  %v204_v39 = vld [vmem:[%s2266_s0 + $0x98] sm:$0xff] }
  0x1e   : > { %1421 = vmatmul.mubr.msk.f32.gmra.mxu0 %vm256_vm1, %v190_v11  ;;  %1469 = vmatmul.mubr.msk.f32.gmra.mxu1 %vm256_vm1, %v222_v12  ;;  %v235_v38 = vld [vmem:[%s2266_s0 + $0x190] sm:$0xff]  ;;  %v236_v40 = vld [vmem:[%s2266_s0 + $0x198] sm:$0xff]  ;;  %v205_v41 = vld [vmem:[%s2266_s0 + $0xa0] sm:$0xff] }
  0x1f   : > { %1423 = vmatprep.mubr.msk.f32.mxu0 %vm256_vm1, %v191_v13  ;;  %1471 = vmatprep.mubr.msk.f32.mxu1 %vm256_vm1, %v223_v14  ;;  %v237_v42 = vld [vmem:[%s2266_s0 + $0x1a0] sm:$0xff]  ;;  %v206_v43 = vld [vmem:[%s2266_s0 + $0xa8] sm:$0xff]  ;;  %v207_v45 = vld [vmem:[%s2266_s0 + $0xb0] sm:$0xff] }
  0x20   : > { %v238_v44 = vld [vmem:[%s2266_s0 + $0x1a8] sm:$0xff]  ;;  %v239_v46 = vld [vmem:[%s2266_s0 + $0x1b0] sm:$0xff]  ;;  %v208_v47 = vld [vmem:[%s2266_s0 + $0xb8] sm:$0xff] }
  0x21   : > { %v240_v48 = vld [vmem:[%s2266_s0 + $0x1b8] sm:$0xff]  ;;  %v209_v49 = vld [vmem:[%s2266_s0 + $0xc0] sm:$0xff]  ;;  %v210_v51 = vld [vmem:[%s2266_s0 + $0xc8] sm:$0xff] }
  0x22   : > { %1424 = vmatmul.mubr.msk.f32.gmra.mxu0 %vm256_vm1, %v192_v15  ;;  %1472 = vmatmul.mubr.msk.f32.gmra.mxu1 %vm256_vm1, %v224_v16  ;;  %v241_v50 = vld [vmem:[%s2266_s0 + $0x1c0] sm:$0xff]  ;;  %v242_v52 = vld [vmem:[%s2266_s0 + $0x1c8] sm:$0xff]  ;;  %v211_v53 = vld [vmem:[%s2266_s0 + $0xd0] sm:$0xff] }
  0x23   : > { %1426 = vmatprep.mubr.msk.f32.mxu0 %vm256_vm1, %v193_v17  ;;  %1474 = vmatprep.mubr.msk.f32.mxu1 %vm256_vm1, %v225_v18  ;;  %v243_v54 = vld [vmem:[%s2266_s0 + $0x1d0] sm:$0xff]  ;;  %v212_v55 = vld [vmem:[%s2266_s0 + $0xd8] sm:$0xff]  ;;  %v213_v57 = vld [vmem:[%s2266_s0 + $0xe0] sm:$0xff] }
  0x24   : > { %v244_v56 = vld [vmem:[%s2266_s0 + $0x1d8] sm:$0xff]  ;;  %v245_v58 = vld [vmem:[%s2266_s0 + $0x1e0] sm:$0xff]  ;;  %v214_v59 = vld [vmem:[%s2266_s0 + $0xe8] sm:$0xff] }
  0x25   : > { %v246_v60 = vld [vmem:[%s2266_s0 + $0x1e8] sm:$0xff]  ;;  %v215_v61 = vld [vmem:[%s2266_s0 + $0xf0] sm:$0xff]  ;;  %v216_v63 = vld [vmem:[%s2266_s0 + $0xf8] sm:$0xff] }
  0x26   : > { %1427 = vmatmul.mubr.msk.f32.gmra.mxu0 %vm256_vm1, %v194_v19  ;;  %1475 = vmatmul.mubr.msk.f32.gmra.mxu1 %vm256_vm1, %v226_v20  ;;  %v247_v62 = vld [vmem:[%s2266_s0 + $0x1f0] sm:$0xff]  ;;  %v248_v0 = vld [vmem:[%s2266_s0 + $0x1f8] sm:$0xff]  ;;  %v1919_v1 = vld [vmem:[%s2268_s2] ss:$0 sm:$0xff] }
  0x27   : > { %1429 = vmatprep.mubr.msk.f32.mxu0 %vm256_vm1, %v195_v21  ;;  %1477 = vmatprep.mubr.msk.f32.mxu1 %vm256_vm1, %v227_v22 }
  0x2a   : > { %1430 = vmatmul.mubr.msk.f32.gmra.mxu0 %vm256_vm1, %v196_v23  ;;  %1478 = vmatmul.mubr.msk.f32.gmra.mxu1 %vm256_vm1, %v228_v24 }
  0x2b   : > { %1432 = vmatprep.mubr.msk.f32.mxu0 %vm256_vm1, %v197_v25  ;;  %1480 = vmatprep.mubr.msk.f32.mxu1 %vm256_vm1, %v229_v26 }
  0x2e   : > { %1433 = vmatmul.mubr.msk.f32.gmra.mxu0 %vm256_vm1, %v198_v27  ;;  %1481 = vmatmul.mubr.msk.f32.gmra.mxu1 %vm256_vm1, %v230_v28 }
  0x2f   : > { %1435 = vmatprep.mubr.msk.f32.mxu0 %vm256_vm1, %v199_v29  ;;  %1483 = vmatprep.mubr.msk.f32.mxu1 %vm256_vm1, %v231_v30 }
  0x32   : > { %1436 = vmatmul.mubr.msk.f32.gmra.mxu0 %vm256_vm1, %v200_v31  ;;  %1484 = vmatmul.mubr.msk.f32.gmra.mxu1 %vm256_vm1, %v232_v32 }
  0x33   : > { %1438 = vmatprep.mubr.msk.f32.mxu0 %vm256_vm1, %v201_v33  ;;  %1486 = vmatprep.mubr.msk.f32.mxu1 %vm256_vm1, %v233_v34 }
  0x36   : > { %1439 = vmatmul.mubr.msk.f32.gmra.mxu0 %vm256_vm1, %v202_v35  ;;  %1487 = vmatmul.mubr.msk.f32.gmra.mxu1 %vm256_vm1, %v234_v36 }
  0x37   : > { %1441 = vmatprep.mubr.msk.f32.mxu0 %vm256_vm1, %v203_v37  ;;  %1489 = vmatprep.mubr.msk.f32.mxu1 %vm256_vm1, %v235_v38 }
  0x3a   : > { %1442 = vmatmul.mubr.msk.f32.gmra.mxu0 %vm256_vm1, %v204_v39  ;;  %1490 = vmatmul.mubr.msk.f32.gmra.mxu1 %vm256_vm1, %v236_v40 }
  0x3b   : > { %1444 = vmatprep.mubr.msk.f32.mxu0 %vm256_vm1, %v205_v41  ;;  %1492 = vmatprep.mubr.msk.f32.mxu1 %vm256_vm1, %v237_v42 }
  0x3e   : > { %1445 = vmatmul.mubr.msk.f32.gmra.mxu0 %vm256_vm1, %v206_v43  ;;  %1493 = vmatmul.mubr.msk.f32.gmra.mxu1 %vm256_vm1, %v238_v44 }
  0x3f   : > { %1447 = vmatprep.mubr.msk.f32.mxu0 %vm256_vm1, %v207_v45  ;;  %1495 = vmatprep.mubr.msk.f32.mxu1 %vm256_vm1, %v239_v46 }
  0x42   : > { %1448 = vmatmul.mubr.msk.f32.gmra.mxu0 %vm256_vm1, %v208_v47  ;;  %1496 = vmatmul.mubr.msk.f32.gmra.mxu1 %vm256_vm1, %v240_v48 }
  0x43   : > { %1450 = vmatprep.mubr.msk.f32.mxu0 %vm256_vm1, %v209_v49  ;;  %1498 = vmatprep.mubr.msk.f32.mxu1 %vm256_vm1, %v241_v50 }
  0x46   : > { %1451 = vmatmul.mubr.msk.f32.gmra.mxu0 %vm256_vm1, %v210_v51  ;;  %1499 = vmatmul.mubr.msk.f32.gmra.mxu1 %vm256_vm1, %v242_v52 }
  0x47   : > { %1453 = vmatprep.mubr.msk.f32.mxu0 %vm256_vm1, %v211_v53  ;;  %1501 = vmatprep.mubr.msk.f32.mxu1 %vm256_vm1, %v243_v54 }
  0x4a   : > { %1454 = vmatmul.mubr.msk.f32.gmra.mxu0 %vm256_vm1, %v212_v55  ;;  %1502 = vmatmul.mubr.msk.f32.gmra.mxu1 %vm256_vm1, %v244_v56 }
  0x4b   : > { %1456 = vmatprep.mubr.msk.f32.mxu0 %vm256_vm1, %v213_v57  ;;  %1504 = vmatprep.mubr.msk.f32.mxu1 %vm256_vm1, %v245_v58 }
  0x4e   : > { %1457 = vmatmul.mubr.msk.f32.gmra.mxu0 %vm256_vm1, %v214_v59  ;;  %1505 = vmatmul.mubr.msk.f32.gmra.mxu1 %vm256_vm1, %v246_v60 }
  0x4f   : > { %1459 = vmatprep.mubr.msk.f32.mxu0 %vm256_vm1, %v215_v61  ;;  %1507 = vmatprep.mubr.msk.f32.mxu1 %vm256_vm1, %v247_v62 }
  0x52   : > { %1460 = vmatmul.mubr.msk.f32.gmra.mxu0 %vm256_vm1, %v216_v63  ;;  %1508 = vmatmul.mubr.msk.f32.gmra.mxu1 %vm256_vm1, %v248_v0 }
  0xd6   : > { %v1416_v2 = vpop.f32.mrf.mxu0  ;;  %v1464_v3 = vpop.f32.mrf.mxu1 }
  0xd7   : > { %v525_v4 = vadd.f32 %v1416_v2, %v1919_v1  ;;  %v685_v5 = vadd.f32 %v1464_v3, %v1919_v1 }
  0xd8   : > { %v519_v6 = vpop.f32.mrf.mxu0  ;;  %v679_v7 = vpop.f32.mrf.mxu1 }
  0xd9   : > { %840 = vst.msk [vmem:[%s1923_s26 + $0x8] sm:$0xff] %vm838_vm2, %v525_v4  ;;  %872 = vst.msk [vmem:[%s1923_s26 + $0x108] sm:$0xff] %vm838_vm2, %v685_v5  ;;  %v520_v8 = vadd.f32 %v1919_v1, %v519_v6  ;;  %v680_v9 = vadd.f32 %v1919_v1, %v679_v7 }
  0xda   : > { %v1419_v10 = vpop.f32.mrf.mxu0  ;;  %v1467_v11 = vpop.f32.mrf.mxu1 }
  0xdb   : > { %839 = vst.msk [vmem:[%s1923_s26] sm:$0xff] %vm838_vm2, %v520_v8  ;;  %871 = vst.msk [vmem:[%s1923_s26 + $0x100] sm:$0xff] %vm838_vm2, %v680_v9  ;;  %v535_v12 = vadd.f32 %v1419_v10, %v1919_v1  ;;  %v695_v13 = vadd.f32 %v1467_v11, %v1919_v1 }
  0xdc   : > { %v529_v14 = vpop.f32.mrf.mxu0  ;;  %v689_v15 = vpop.f32.mrf.mxu1 }
  0xdd   : > { %842 = vst.msk [vmem:[%s1923_s26 + $0x18] sm:$0xff] %vm838_vm2, %v535_v12  ;;  %874 = vst.msk [vmem:[%s1923_s26 + $0x118] sm:$0xff] %vm838_vm2, %v695_v13  ;;  %v530_v16 = vadd.f32 %v1919_v1, %v529_v14  ;;  %v690_v17 = vadd.f32 %v1919_v1, %v689_v15 }
  0xde   : > { %v1422_v18 = vpop.f32.mrf.mxu0  ;;  %v1470_v19 = vpop.f32.mrf.mxu1 }
  0xdf   : > { %841 = vst.msk [vmem:[%s1923_s26 + $0x10] sm:$0xff] %vm838_vm2, %v530_v16  ;;  %873 = vst.msk [vmem:[%s1923_s26 + $0x110] sm:$0xff] %vm838_vm2, %v690_v17  ;;  %v545_v20 = vadd.f32 %v1422_v18, %v1919_v1  ;;  %v705_v21 = vadd.f32 %v1470_v19, %v1919_v1 }
  0xe0   : > { %v539_v22 = vpop.f32.mrf.mxu0  ;;  %v699_v23 = vpop.f32.mrf.mxu1 }
  0xe1   : > { %844 = vst.msk [vmem:[%s1923_s26 + $0x28] sm:$0xff] %vm838_vm2, %v545_v20  ;;  %876 = vst.msk [vmem:[%s1923_s26 + $0x128] sm:$0xff] %vm838_vm2, %v705_v21  ;;  %v540_v24 = vadd.f32 %v1919_v1, %v539_v22  ;;  %v700_v25 = vadd.f32 %v1919_v1, %v699_v23 }
  0xe2   : > { %v1425_v26 = vpop.f32.mrf.mxu0  ;;  %v1473_v27 = vpop.f32.mrf.mxu1 }
  0xe3   : > { %843 = vst.msk [vmem:[%s1923_s26 + $0x20] sm:$0xff] %vm838_vm2, %v540_v24  ;;  %875 = vst.msk [vmem:[%s1923_s26 + $0x120] sm:$0xff] %vm838_vm2, %v700_v25  ;;  %v555_v28 = vadd.f32 %v1425_v26, %v1919_v1  ;;  %v715_v29 = vadd.f32 %v1473_v27, %v1919_v1 }
  0xe4   : > { %v549_v30 = vpop.f32.mrf.mxu0  ;;  %v709_v31 = vpop.f32.mrf.mxu1 }
  0xe5   : > { %846 = vst.msk [vmem:[%s1923_s26 + $0x38] sm:$0xff] %vm838_vm2, %v555_v28  ;;  %878 = vst.msk [vmem:[%s1923_s26 + $0x138] sm:$0xff] %vm838_vm2, %v715_v29  ;;  %v550_v32 = vadd.f32 %v1919_v1, %v549_v30  ;;  %v710_v33 = vadd.f32 %v1919_v1, %v709_v31 }
  0xe6   : > { %v1428_v34 = vpop.f32.mrf.mxu0  ;;  %v1476_v35 = vpop.f32.mrf.mxu1 }
  0xe7   : > { %845 = vst.msk [vmem:[%s1923_s26 + $0x30] sm:$0xff] %vm838_vm2, %v550_v32  ;;  %877 = vst.msk [vmem:[%s1923_s26 + $0x130] sm:$0xff] %vm838_vm2, %v710_v33  ;;  %v565_v36 = vadd.f32 %v1428_v34, %v1919_v1  ;;  %v725_v37 = vadd.f32 %v1476_v35, %v1919_v1 }
  0xe8   : > { %v559_v38 = vpop.f32.mrf.mxu0  ;;  %v719_v39 = vpop.f32.mrf.mxu1 }
  0xe9   : > { %848 = vst.msk [vmem:[%s1923_s26 + $0x48] sm:$0xff] %vm838_vm2, %v565_v36  ;;  %880 = vst.msk [vmem:[%s1923_s26 + $0x148] sm:$0xff] %vm838_vm2, %v725_v37  ;;  %v560_v40 = vadd.f32 %v1919_v1, %v559_v38  ;;  %v720_v41 = vadd.f32 %v1919_v1, %v719_v39 }
  0xea   : > { %v1431_v42 = vpop.f32.mrf.mxu0  ;;  %v1479_v43 = vpop.f32.mrf.mxu1 }
  0xeb   : > { %847 = vst.msk [vmem:[%s1923_s26 + $0x40] sm:$0xff] %vm838_vm2, %v560_v40  ;;  %879 = vst.msk [vmem:[%s1923_s26 + $0x140] sm:$0xff] %vm838_vm2, %v720_v41  ;;  %v575_v44 = vadd.f32 %v1431_v42, %v1919_v1  ;;  %v735_v45 = vadd.f32 %v1479_v43, %v1919_v1 }
  0xec   : > { %v569_v46 = vpop.f32.mrf.mxu0  ;;  %v729_v47 = vpop.f32.mrf.mxu1 }
  0xed   : > { %850 = vst.msk [vmem:[%s1923_s26 + $0x58] sm:$0xff] %vm838_vm2, %v575_v44  ;;  %882 = vst.msk [vmem:[%s1923_s26 + $0x158] sm:$0xff] %vm838_vm2, %v735_v45  ;;  %v570_v48 = vadd.f32 %v1919_v1, %v569_v46  ;;  %v730_v49 = vadd.f32 %v1919_v1, %v729_v47 }
  0xee   : > { %v1434_v50 = vpop.f32.mrf.mxu0  ;;  %v1482_v51 = vpop.f32.mrf.mxu1 }
  0xef   : > { %849 = vst.msk [vmem:[%s1923_s26 + $0x50] sm:$0xff] %vm838_vm2, %v570_v48  ;;  %881 = vst.msk [vmem:[%s1923_s26 + $0x150] sm:$0xff] %vm838_vm2, %v730_v49  ;;  %v585_v52 = vadd.f32 %v1434_v50, %v1919_v1  ;;  %v745_v53 = vadd.f32 %v1482_v51, %v1919_v1 }
  0xf0   : > { %v579_v54 = vpop.f32.mrf.mxu0  ;;  %v739_v55 = vpop.f32.mrf.mxu1 }
  0xf1   : > { %852 = vst.msk [vmem:[%s1923_s26 + $0x68] sm:$0xff] %vm838_vm2, %v585_v52  ;;  %884 = vst.msk [vmem:[%s1923_s26 + $0x168] sm:$0xff] %vm838_vm2, %v745_v53  ;;  %v580_v56 = vadd.f32 %v1919_v1, %v579_v54  ;;  %v740_v57 = vadd.f32 %v1919_v1, %v739_v55 }
  0xf2   : > { %v1437_v58 = vpop.f32.mrf.mxu0  ;;  %v1485_v59 = vpop.f32.mrf.mxu1 }
  0xf3   : > { %851 = vst.msk [vmem:[%s1923_s26 + $0x60] sm:$0xff] %vm838_vm2, %v580_v56  ;;  %883 = vst.msk [vmem:[%s1923_s26 + $0x160] sm:$0xff] %vm838_vm2, %v740_v57  ;;  %v595_v60 = vadd.f32 %v1437_v58, %v1919_v1  ;;  %v755_v61 = vadd.f32 %v1485_v59, %v1919_v1 }
  0xf4   : > { %v589_v62 = vpop.f32.mrf.mxu0  ;;  %v749_v63 = vpop.f32.mrf.mxu1 }
  0xf5   : > { %854 = vst.msk [vmem:[%s1923_s26 + $0x78] sm:$0xff] %vm838_vm2, %v595_v60  ;;  %886 = vst.msk [vmem:[%s1923_s26 + $0x178] sm:$0xff] %vm838_vm2, %v755_v61  ;;  %v590_v0 = vadd.f32 %v1919_v1, %v589_v62  ;;  %v750_v2 = vadd.f32 %v1919_v1, %v749_v63 }
  0xf6   : > { %v1440_v3 = vpop.f32.mrf.mxu0  ;;  %v1488_v4 = vpop.f32.mrf.mxu1 }
  0xf7   : > { %853 = vst.msk [vmem:[%s1923_s26 + $0x70] sm:$0xff] %vm838_vm2, %v590_v0  ;;  %885 = vst.msk [vmem:[%s1923_s26 + $0x170] sm:$0xff] %vm838_vm2, %v750_v2  ;;  %v605_v5 = vadd.f32 %v1440_v3, %v1919_v1  ;;  %v765_v6 = vadd.f32 %v1488_v4, %v1919_v1  ;;  %v1070_v4 = vld [vmem:[%s1923_s26] sm:$0xff] (%p1644_p3) }
  0xf8   : > { %v599_v7 = vpop.f32.mrf.mxu0  ;;  %v759_v8 = vpop.f32.mrf.mxu1  ;;  %1071 = vst [vmem:[%s2124_s29] sm:$0xff] (%p1644_p3), %v1070_v4 }
  0xf9   : > { %856 = vst.msk [vmem:[%s1923_s26 + $0x88] sm:$0xff] %vm838_vm2, %v605_v5  ;;  %888 = vst.msk [vmem:[%s1923_s26 + $0x188] sm:$0xff] %vm838_vm2, %v765_v6  ;;  %v600_v9 = vadd.f32 %v1919_v1, %v599_v7  ;;  %v760_v10 = vadd.f32 %v1919_v1, %v759_v8  ;;  %v1074_v5 = vld [vmem:[%s1923_s26 + $0x10] sm:$0xff] (%p1644_p3)  ;;  %v1076_v6 = vld [vmem:[%s1923_s26 + $0x18] sm:$0xff] (%p1644_p3) }
  0xfa   : > { %v1443_v11 = vpop.f32.mrf.mxu0  ;;  %v1491_v12 = vpop.f32.mrf.mxu1  ;;  %v1078_v7 = vld [vmem:[%s1923_s26 + $0x20] sm:$0xff] (%p1644_p3)  ;;  %v1080_v8 = vld [vmem:[%s1923_s26 + $0x28] sm:$0xff] (%p1644_p3)  ;;  %1075 = vst [vmem:[%s2124_s29 + $0x20] sm:$0xff] (%p1644_p3), %v1074_v5  ;;  %1077 = vst [vmem:[%s2124_s29 + $0x28] sm:$0xff] (%p1644_p3), %v1076_v6 }
  0xfb   : > { %855 = vst.msk [vmem:[%s1923_s26 + $0x80] sm:$0xff] %vm838_vm2, %v600_v9  ;;  %887 = vst.msk [vmem:[%s1923_s26 + $0x180] sm:$0xff] %vm838_vm2, %v760_v10  ;;  %v615_v13 = vadd.f32 %v1443_v11, %v1919_v1  ;;  %v775_v14 = vadd.f32 %v1491_v12, %v1919_v1  ;;  %v1082_v9 = vld [vmem:[%s1923_s26 + $0x30] sm:$0xff] (%p1644_p3)  ;;  %v1084_v10 = vld [vmem:[%s1923_s26 + $0x38] sm:$0xff] (%p1644_p3) }
  0xfc   : > { %v609_v15 = vpop.f32.mrf.mxu0  ;;  %v769_v16 = vpop.f32.mrf.mxu1  ;;  %1079 = vst [vmem:[%s2124_s29 + $0x40] sm:$0xff] (%p1644_p3), %v1078_v7  ;;  %1081 = vst [vmem:[%s2124_s29 + $0x48] sm:$0xff] (%p1644_p3), %v1080_v8  ;;  %v1086_v11 = vld [vmem:[%s1923_s26 + $0x40] sm:$0xff] (%p1644_p3)  ;;  %v1088_v12 = vld [vmem:[%s1923_s26 + $0x48] sm:$0xff] (%p1644_p3) }
  0xfd   : > { %858 = vst.msk [vmem:[%s1923_s26 + $0x98] sm:$0xff] %vm838_vm2, %v615_v13  ;;  %890 = vst.msk [vmem:[%s1923_s26 + $0x198] sm:$0xff] %vm838_vm2, %v775_v14  ;;  %v610_v17 = vadd.f32 %v1919_v1, %v609_v15  ;;  %v770_v18 = vadd.f32 %v1919_v1, %v769_v16  ;;  %v1090_v13 = vld [vmem:[%s1923_s26 + $0x50] sm:$0xff] (%p1644_p3)  ;;  %v1092_v14 = vld [vmem:[%s1923_s26 + $0x58] sm:$0xff] (%p1644_p3) }
  0xfe   : > { %v1446_v19 = vpop.f32.mrf.mxu0  ;;  %v1494_v20 = vpop.f32.mrf.mxu1  ;;  %1083 = vst [vmem:[%s2124_s29 + $0x60] sm:$0xff] (%p1644_p3), %v1082_v9  ;;  %1085 = vst [vmem:[%s2124_s29 + $0x68] sm:$0xff] (%p1644_p3), %v1084_v10  ;;  %v1094_v15 = vld [vmem:[%s1923_s26 + $0x60] sm:$0xff] (%p1644_p3)  ;;  %v1096_v16 = vld [vmem:[%s1923_s26 + $0x68] sm:$0xff] (%p1644_p3) }
  0xff   : > { %857 = vst.msk [vmem:[%s1923_s26 + $0x90] sm:$0xff] %vm838_vm2, %v610_v17  ;;  %889 = vst.msk [vmem:[%s1923_s26 + $0x190] sm:$0xff] %vm838_vm2, %v770_v18  ;;  %v625_v21 = vadd.f32 %v1446_v19, %v1919_v1  ;;  %v785_v22 = vadd.f32 %v1494_v20, %v1919_v1  ;;  %v1098_v17 = vld [vmem:[%s1923_s26 + $0x70] sm:$0xff] (%p1644_p3)  ;;  %v1100_v18 = vld [vmem:[%s1923_s26 + $0x78] sm:$0xff] (%p1644_p3) }
 0x100   : > { %v619_v23 = vpop.f32.mrf.mxu0  ;;  %v779_v24 = vpop.f32.mrf.mxu1  ;;  %1087 = vst [vmem:[%s2124_s29 + $0x80] sm:$0xff] (%p1644_p3), %v1086_v11  ;;  %1089 = vst [vmem:[%s2124_s29 + $0x88] sm:$0xff] (%p1644_p3), %v1088_v12  ;;  %v1104_v20 = vld [vmem:[%s1923_s26 + $0x88] sm:$0xff] (%p1644_p3) }
 0x101   : > { %860 = vst.msk [vmem:[%s1923_s26 + $0xa8] sm:$0xff] %vm838_vm2, %v625_v21  ;;  %892 = vst.msk [vmem:[%s1923_s26 + $0x1a8] sm:$0xff] %vm838_vm2, %v785_v22  ;;  %v620_v25 = vadd.f32 %v1919_v1, %v619_v23  ;;  %v780_v26 = vadd.f32 %v1919_v1, %v779_v24 }
 0x102   : > { %v1449_v27 = vpop.f32.mrf.mxu0  ;;  %v1497_v28 = vpop.f32.mrf.mxu1  ;;  %1091 = vst [vmem:[%s2124_s29 + $0xa0] sm:$0xff] (%p1644_p3), %v1090_v13  ;;  %1093 = vst [vmem:[%s2124_s29 + $0xa8] sm:$0xff] (%p1644_p3), %v1092_v14  ;;  %v1102_v19 = vld [vmem:[%s1923_s26 + $0x80] sm:$0xff] (%p1644_p3) }
 0x103   : > { %859 = vst.msk [vmem:[%s1923_s26 + $0xa0] sm:$0xff] %vm838_vm2, %v620_v25  ;;  %891 = vst.msk [vmem:[%s1923_s26 + $0x1a0] sm:$0xff] %vm838_vm2, %v780_v26  ;;  %v635_v29 = vadd.f32 %v1449_v27, %v1919_v1  ;;  %v795_v30 = vadd.f32 %v1497_v28, %v1919_v1 }
 0x104   : > { %v629_v31 = vpop.f32.mrf.mxu0  ;;  %v789_v32 = vpop.f32.mrf.mxu1  ;;  %1095 = vst [vmem:[%s2124_s29 + $0xc0] sm:$0xff] (%p1644_p3), %v1094_v15  ;;  %1097 = vst [vmem:[%s2124_s29 + $0xc8] sm:$0xff] (%p1644_p3), %v1096_v16  ;;  %v1108_v22 = vld [vmem:[%s1923_s26 + $0x98] sm:$0xff] (%p1644_p3) }
 0x105   : > { %862 = vst.msk [vmem:[%s1923_s26 + $0xb8] sm:$0xff] %vm838_vm2, %v635_v29  ;;  %894 = vst.msk [vmem:[%s1923_s26 + $0x1b8] sm:$0xff] %vm838_vm2, %v795_v30  ;;  %v630_v33 = vadd.f32 %v1919_v1, %v629_v31  ;;  %v790_v34 = vadd.f32 %v1919_v1, %v789_v32 }
 0x106   : > { %v1452_v35 = vpop.f32.mrf.mxu0  ;;  %v1500_v36 = vpop.f32.mrf.mxu1  ;;  %1099 = vst [vmem:[%s2124_s29 + $0xe0] sm:$0xff] (%p1644_p3), %v1098_v17  ;;  %1101 = vst [vmem:[%s2124_s29 + $0xe8] sm:$0xff] (%p1644_p3), %v1100_v18  ;;  %v1106_v21 = vld [vmem:[%s1923_s26 + $0x90] sm:$0xff] (%p1644_p3) }
 0x107   : > { %861 = vst.msk [vmem:[%s1923_s26 + $0xb0] sm:$0xff] %vm838_vm2, %v630_v33  ;;  %893 = vst.msk [vmem:[%s1923_s26 + $0x1b0] sm:$0xff] %vm838_vm2, %v790_v34  ;;  %v645_v37 = vadd.f32 %v1452_v35, %v1919_v1  ;;  %v805_v38 = vadd.f32 %v1500_v36, %v1919_v1  ;;  %v1134_v35 = vld [vmem:[%s1923_s26 + $0x100] sm:$0xff] (%p1644_p3)  ;;  %v1136_v36 = vld [vmem:[%s1923_s26 + $0x108] sm:$0xff] (%p1644_p3) }
 0x108   : > { %v639_v39 = vpop.f32.mrf.mxu0  ;;  %v799_v40 = vpop.f32.mrf.mxu1  ;;  %1103 = vst [vmem:[%s2124_s29 + $0x100] sm:$0xff] (%p1644_p3), %v1102_v19  ;;  %1105 = vst [vmem:[%s2124_s29 + $0x108] sm:$0xff] (%p1644_p3), %v1104_v20  ;;  %v1112_v24 = vld [vmem:[%s1923_s26 + $0xa8] sm:$0xff] (%p1644_p3) }
 0x109   : > { %864 = vst.msk [vmem:[%s1923_s26 + $0xc8] sm:$0xff] %vm838_vm2, %v645_v37  ;;  %896 = vst.msk [vmem:[%s1923_s26 + $0x1c8] sm:$0xff] %vm838_vm2, %v805_v38  ;;  %v640_v41 = vadd.f32 %v1919_v1, %v639_v39  ;;  %v800_v42 = vadd.f32 %v1919_v1, %v799_v40  ;;  %v1138_v37 = vld [vmem:[%s1923_s26 + $0x110] sm:$0xff] (%p1644_p3)  ;;  %v1140_v38 = vld [vmem:[%s1923_s26 + $0x118] sm:$0xff] (%p1644_p3) }
 0x10a   : > { %v1455_v43 = vpop.f32.mrf.mxu0  ;;  %v1503_v44 = vpop.f32.mrf.mxu1  ;;  %v1110_v23 = vld [vmem:[%s1923_s26 + $0xa0] sm:$0xff] (%p1644_p3)  ;;  %1107 = vst [vmem:[%s2124_s29 + $0x120] sm:$0xff] (%p1644_p3), %v1106_v21  ;;  %1109 = vst [vmem:[%s2124_s29 + $0x128] sm:$0xff] (%p1644_p3), %v1108_v22  ;;  %v1144_v40 = vld [vmem:[%s1923_s26 + $0x128] sm:$0xff] (%p1644_p3) }
 0x10b   : > { %863 = vst.msk [vmem:[%s1923_s26 + $0xc0] sm:$0xff] %vm838_vm2, %v640_v41  ;;  %895 = vst.msk [vmem:[%s1923_s26 + $0x1c0] sm:$0xff] %vm838_vm2, %v800_v42  ;;  %v655_v45 = vadd.f32 %v1455_v43, %v1919_v1  ;;  %v815_v46 = vadd.f32 %v1503_v44, %v1919_v1  ;;  %v1142_v39 = vld [vmem:[%s1923_s26 + $0x120] sm:$0xff] (%p1644_p3)  ;;  %v1146_v41 = vld [vmem:[%s1923_s26 + $0x130] sm:$0xff] (%p1644_p3) }
 0x10c   : > { %v649_v47 = vpop.f32.mrf.mxu0  ;;  %v809_v48 = vpop.f32.mrf.mxu1  ;;  %1111 = vst [vmem:[%s2124_s29 + $0x140] sm:$0xff] (%p1644_p3), %v1110_v23  ;;  %v1116_v26 = vld [vmem:[%s1923_s26 + $0xb8] sm:$0xff] (%p1644_p3)  ;;  %1113 = vst [vmem:[%s2124_s29 + $0x148] sm:$0xff] (%p1644_p3), %v1112_v24  ;;  %v1150_v43 = vld [vmem:[%s1923_s26 + $0x140] sm:$0xff] (%p1644_p3) }
 0x10d   : > { %866 = vst.msk [vmem:[%s1923_s26 + $0xd8] sm:$0xff] %vm838_vm2, %v655_v45  ;;  %898 = vst.msk [vmem:[%s1923_s26 + $0x1d8] sm:$0xff] %vm838_vm2, %v815_v46  ;;  %v650_v49 = vadd.f32 %v1919_v1, %v649_v47  ;;  %v810_v50 = vadd.f32 %v1919_v1, %v809_v48  ;;  %v1148_v42 = vld [vmem:[%s1923_s26 + $0x138] sm:$0xff] (%p1644_p3)  ;;  %v1152_v44 = vld [vmem:[%s1923_s26 + $0x148] sm:$0xff] (%p1644_p3) }
 0x10e   : > { %v1458_v51 = vpop.f32.mrf.mxu0  ;;  %v1506_v52 = vpop.f32.mrf.mxu1  ;;  %v1114_v25 = vld [vmem:[%s1923_s26 + $0xb0] sm:$0xff] (%p1644_p3)  ;;  %1117 = vst [vmem:[%s2124_s29 + $0x168] sm:$0xff] (%p1644_p3), %v1116_v26  ;;  %1135 = vst [vmem:[%s2124_s29 + $0x200] sm:$0xff] (%p1644_p3), %v1134_v35  ;;  %v1156_v46 = vld [vmem:[%s1923_s26 + $0x158] sm:$0xff] (%p1644_p3) }
 0x10f   : > { %865 = vst.msk [vmem:[%s1923_s26 + $0xd0] sm:$0xff] %vm838_vm2, %v650_v49  ;;  %897 = vst.msk [vmem:[%s1923_s26 + $0x1d0] sm:$0xff] %vm838_vm2, %v810_v50  ;;  %v665_v53 = vadd.f32 %v1458_v51, %v1919_v1  ;;  %v825_v54 = vadd.f32 %v1506_v52, %v1919_v1  ;;  %v1154_v45 = vld [vmem:[%s1923_s26 + $0x150] sm:$0xff] (%p1644_p3)  ;;  %v1158_v47 = vld [vmem:[%s1923_s26 + $0x160] sm:$0xff] (%p1644_p3) }
 0x110   : > { %v659_v55 = vpop.f32.mrf.mxu0  ;;  %v819_v56 = vpop.f32.mrf.mxu1  ;;  %1115 = vst [vmem:[%s2124_s29 + $0x160] sm:$0xff] (%p1644_p3), %v1114_v25  ;;  %v1120_v28 = vld [vmem:[%s1923_s26 + $0xc8] sm:$0xff] (%p1644_p3)  ;;  %1137 = vst [vmem:[%s2124_s29 + $0x208] sm:$0xff] (%p1644_p3), %v1136_v36  ;;  %v1162_v49 = vld [vmem:[%s1923_s26 + $0x170] sm:$0xff] (%p1644_p3) }
 0x111   : > { %868 = vst.msk [vmem:[%s1923_s26 + $0xe8] sm:$0xff] %vm838_vm2, %v665_v53  ;;  %900 = vst.msk [vmem:[%s1923_s26 + $0x1e8] sm:$0xff] %vm838_vm2, %v825_v54  ;;  %v660_v57 = vadd.f32 %v1919_v1, %v659_v55  ;;  %v820_v58 = vadd.f32 %v1919_v1, %v819_v56  ;;  %v1160_v48 = vld [vmem:[%s1923_s26 + $0x168] sm:$0xff] (%p1644_p3)  ;;  %v1164_v50 = vld [vmem:[%s1923_s26 + $0x178] sm:$0xff] (%p1644_p3) }
 0x112   : > { %v1461_v59 = vpop.f32.mrf.mxu0  ;;  %v1509_v60 = vpop.f32.mrf.mxu1  ;;  %v1118_v27 = vld [vmem:[%s1923_s26 + $0xc0] sm:$0xff] (%p1644_p3)  ;;  %1121 = vst [vmem:[%s2124_s29 + $0x188] sm:$0xff] (%p1644_p3), %v1120_v28  ;;  %1139 = vst [vmem:[%s2124_s29 + $0x220] sm:$0xff] (%p1644_p3), %v1138_v37  ;;  %v1168_v52 = vld [vmem:[%s1923_s26 + $0x188] sm:$0xff] (%p1644_p3) }
 0x113   : > { %867 = vst.msk [vmem:[%s1923_s26 + $0xe0] sm:$0xff] %vm838_vm2, %v660_v57  ;;  %899 = vst.msk [vmem:[%s1923_s26 + $0x1e0] sm:$0xff] %vm838_vm2, %v820_v58  ;;  %v675_v61 = vadd.f32 %v1461_v59, %v1919_v1  ;;  %v835_v62 = vadd.f32 %v1509_v60, %v1919_v1  ;;  %909 = sbr.rel (!%p1644_p3) target bundleno = 297 (0x129), region = 36  ;;  %v1166_v51 = vld [vmem:[%s1923_s26 + $0x180] sm:$0xff] (%p1644_p3)  ;;  %v1170_v53 = vld [vmem:[%s1923_s26 + $0x190] sm:$0xff] (%p1644_p3) }
 0x114   : > { %v669_v63 = vpop.f32.mrf.mxu0  ;;  %v829_v0 = vpop.f32.mrf.mxu1  ;;  %1119 = vst [vmem:[%s2124_s29 + $0x180] sm:$0xff] (%p1644_p3), %v1118_v27  ;;  %v1124_v30 = vld [vmem:[%s1923_s26 + $0xd8] sm:$0xff] (%p1644_p3)  ;;  %1141 = vst [vmem:[%s2124_s29 + $0x228] sm:$0xff] (%p1644_p3), %v1140_v38  ;;  %v1174_v55 = vld [vmem:[%s1923_s26 + $0x1a0] sm:$0xff] (%p1644_p3) }
 0x115   : > { %870 = vst.msk [vmem:[%s1923_s26 + $0xf8] sm:$0xff] %vm838_vm2, %v675_v61  ;;  %902 = vst.msk [vmem:[%s1923_s26 + $0x1f8] sm:$0xff] %vm838_vm2, %v835_v62  ;;  %v670_v2 = vadd.f32 %v1919_v1, %v669_v63  ;;  %v830_v3 = vadd.f32 %v1919_v1, %v829_v0  ;;  %v1072_v1 = vld [vmem:[%s1923_s26 + $0x8] sm:$0xff] (%p1644_p3)  ;;  %v1172_v54 = vld [vmem:[%s1923_s26 + $0x198] sm:$0xff] (%p1644_p3) }
 0x116   : > { %1073 = vst [vmem:[%s2124_s29 + $0x8] sm:$0xff] (%p1644_p3), %v1072_v1  ;;  %v1122_v29 = vld [vmem:[%s1923_s26 + $0xd0] sm:$0xff] (%p1644_p3)  ;;  %1125 = vst [vmem:[%s2124_s29 + $0x1a8] sm:$0xff] (%p1644_p3), %v1124_v30  ;;  %v1176_v56 = vld [vmem:[%s1923_s26 + $0x1a8] sm:$0xff] (%p1644_p3) }
 0x117   : > { %869 = vst.msk [vmem:[%s1923_s26 + $0xf0] sm:$0xff] %vm838_vm2, %v670_v2  ;;  %901 = vst.msk [vmem:[%s1923_s26 + $0x1f0] sm:$0xff] %vm838_vm2, %v830_v3  ;;  %v1178_v57 = vld [vmem:[%s1923_s26 + $0x1b0] sm:$0xff] (%p1644_p3)  ;;  %v1180_v58 = vld [vmem:[%s1923_s26 + $0x1b8] sm:$0xff] (%p1644_p3) }
 0x118   : > { %1123 = vst [vmem:[%s2124_s29 + $0x1a0] sm:$0xff] %v1122_v29  ;;  %v1128_v32 = vld [vmem:[%s1923_s26 + $0xe8] sm:$0xff]  ;;  %1143 = vst [vmem:[%s2124_s29 + $0x240] sm:$0xff] %v1142_v39  ;;  %v1182_v59 = vld [vmem:[%s1923_s26 + $0x1c0] sm:$0xff] }
 0x119   : > { %1129 = vst [vmem:[%s2124_s29 + $0x1c8] sm:$0xff] %v1128_v32  ;;  %1145 = vst [vmem:[%s2124_s29 + $0x248] sm:$0xff] %v1144_v40  ;;  %v1184_v60 = vld [vmem:[%s1923_s26 + $0x1c8] sm:$0xff]  ;;  %v1186_v61 = vld [vmem:[%s1923_s26 + $0x1d0] sm:$0xff] }
 0x11a   : > { %v1126_v31 = vld [vmem:[%s1923_s26 + $0xe0] sm:$0xff]  ;;  %1147 = vst [vmem:[%s2124_s29 + $0x260] sm:$0xff] %v1146_v41  ;;  %1149 = vst [vmem:[%s2124_s29 + $0x268] sm:$0xff] %v1148_v42  ;;  %v1188_v62 = vld [vmem:[%s1923_s26 + $0x1d8] sm:$0xff] }
 0x11b   : > { %1127 = vst [vmem:[%s2124_s29 + $0x1c0] sm:$0xff] %v1126_v31  ;;  %1151 = vst [vmem:[%s2124_s29 + $0x280] sm:$0xff] %v1150_v43  ;;  %v1190_v63 = vld [vmem:[%s1923_s26 + $0x1e0] sm:$0xff]  ;;  %v1192_v0 = vld [vmem:[%s1923_s26 + $0x1e8] sm:$0xff] }
 0x11c   : > { %v1132_v34 = vld [vmem:[%s1923_s26 + $0xf8] sm:$0xff]  ;;  %1153 = vst [vmem:[%s2124_s29 + $0x288] sm:$0xff] %v1152_v44  ;;  %1155 = vst [vmem:[%s2124_s29 + $0x2a0] sm:$0xff] %v1154_v45 }
 0x11d   : > { %1133 = vst [vmem:[%s2124_s29 + $0x1e8] sm:$0xff] %v1132_v34  ;;  %1157 = vst [vmem:[%s2124_s29 + $0x2a8] sm:$0xff] %v1156_v46  ;;  %v1196_v3 = vld [vmem:[%s1923_s26 + $0x1f8] sm:$0xff] }
 0x11e   : > { %v1130_v33 = vld [vmem:[%s1923_s26 + $0xf0] sm:$0xff]  ;;  %1159 = vst [vmem:[%s2124_s29 + $0x2c0] sm:$0xff] %v1158_v47  ;;  %1161 = vst [vmem:[%s2124_s29 + $0x2c8] sm:$0xff] %v1160_v48 }
 0x11f   : > { %1131 = vst [vmem:[%s2124_s29 + $0x1e0] sm:$0xff] %v1130_v33  ;;  %1163 = vst [vmem:[%s2124_s29 + $0x2e0] sm:$0xff] %v1162_v49  ;;  %v1194_v2 = vld [vmem:[%s1923_s26 + $0x1f0] sm:$0xff] }
 0x120   : > { %1165 = vst [vmem:[%s2124_s29 + $0x2e8] sm:$0xff] %v1164_v50  ;;  %1167 = vst [vmem:[%s2124_s29 + $0x300] sm:$0xff] %v1166_v51 }
 0x121   : > { %1169 = vst [vmem:[%s2124_s29 + $0x308] sm:$0xff] %v1168_v52  ;;  %1171 = vst [vmem:[%s2124_s29 + $0x320] sm:$0xff] %v1170_v53 }
 0x122   : > { %1173 = vst [vmem:[%s2124_s29 + $0x328] sm:$0xff] %v1172_v54  ;;  %1175 = vst [vmem:[%s2124_s29 + $0x340] sm:$0xff] %v1174_v55 }
 0x123   : > { %1177 = vst [vmem:[%s2124_s29 + $0x348] sm:$0xff] %v1176_v56  ;;  %1179 = vst [vmem:[%s2124_s29 + $0x360] sm:$0xff] %v1178_v57 }
 0x124   : > { %1181 = vst [vmem:[%s2124_s29 + $0x368] sm:$0xff] %v1180_v58  ;;  %1183 = vst [vmem:[%s2124_s29 + $0x380] sm:$0xff] %v1182_v59 }
 0x125   : > { %1185 = vst [vmem:[%s2124_s29 + $0x388] sm:$0xff] %v1184_v60  ;;  %1187 = vst [vmem:[%s2124_s29 + $0x3a0] sm:$0xff] %v1186_v61 }
 0x126   : > { %1189 = vst [vmem:[%s2124_s29 + $0x3a8] sm:$0xff] %v1188_v62  ;;  %1191 = vst [vmem:[%s2124_s29 + $0x3c0] sm:$0xff] %v1190_v63 }
 0x127   : > { %1193 = vst [vmem:[%s2124_s29 + $0x3c8] sm:$0xff] %v1192_v0  ;;  %1195 = vst [vmem:[%s2124_s29 + $0x3e0] sm:$0xff] %v1194_v2 }
 0x128   : > { %1197 = vst [vmem:[%s2124_s29 + $0x3e8] sm:$0xff] %v1196_v3 }
 0x129 PF: > { %s13_s16 = sadd.s32 1, %s1590_s16   ;;  %s2271_s12 = smov %s1578_s13 }
 0x12a   : > { %p10_p8 = scmp.ge.s32.totalorder %s13_s16, 4   ;;  %s2272_s13 = smov %s1653_s22 }
 0x12b   : > { %s2273_s14 = smov %s1586_s15  ;;  %s2274_s15 = smov %s2276_s18 }
 0x12c   :  { %12 = sbr.rel (!%p10_p8) target bundleno = 3 (0x3), region = 101 }

</bundles_post_ra>
